<compile_context>
chip_gen: v6e
topology: v6e:2x2x1
jax: 0.10.0
libtpu: 0.0.40
codegen_flags: <defaults>
</compile_context>

<pallas_src>
import jax
import jax.numpy as jnp
from jax import lax
from jax.experimental import pallas as pl
from jax.experimental.pallas import tpu as pltpu


def _round_up(x, m):
    return ((x + m - 1) // m) * m


def rnn_fc_kernel(p_ref, whh_ref, wfc_ref, bfc_ref, out_ref):
    # p_ref:   (seq, Bp, Hp)  precomputed input projection with both biases folded in
    # whh_ref: (Hp, Hp)       W_hh^T (zero-padded)
    # wfc_ref: (Hp, Cp)       W_fc^T (zero-padded)
    # bfc_ref: (1, Cp)        b_fc   (zero-padded)
    # out_ref: (Bp, Cp)
    seq_len = p_ref.shape[0]
    whh = whh_ref[...]                                   # hoist invariant weight load
    h0 = jnp.zeros(p_ref.shape[1:], jnp.float32)         # h_0 = 0 (state=None)

    def step(t, h):
        pre = p_ref[t] + jnp.dot(h, whh, preferred_element_type=jnp.float32)
        return jnp.maximum(pre, 0.0)                     # nonlinearity='relu'

    h_last = lax.fori_loop(0, seq_len, step, h0, unroll=True)

    out_ref[...] = (jnp.dot(h_last, wfc_ref[...], preferred_element_type=jnp.float32)
                    + bfc_ref[...]).astype(out_ref.dtype)


def rnn_forward(x_ids, params):
    """x_ids: [batch, seq_len] int32 token ids. Returns pred [batch, num_classes]."""
    emb_table = params["emb"]           # [vocab, emb]
    w_ih = params["w_ih"]               # [hidden, emb]
    w_hh = params["w_hh"]               # [hidden, hidden]
    b_ih = params["b_ih"]               # [hidden]
    b_hh = params["b_hh"]               # [hidden]
    w_fc = params["w_fc"]               # [num_classes, hidden]
    b_fc = params["b_fc"]               # [num_classes]

    batch, seq_len = x_ids.shape
    hidden = w_hh.shape[0]
    num_classes = w_fc.shape[0]

    b_pad = _round_up(batch, 8)         # sublanes
    h_pad = _round_up(hidden, 128)      # lanes
    c_pad = _round_up(num_classes, 128)

    # Glue (XLA): embedding gather, time-major transpose, hoisted input
    # projection with b_ih + b_hh folded in — one big matmul, no recurrence.
    x_emb = jnp.take(emb_table, x_ids, axis=0)            # [batch, seq, emb]
    x_tmaj = jnp.transpose(x_emb, (1, 0, 2))              # [seq, batch, emb]
    p = jnp.einsum("sbe,he->sbh", x_tmaj, w_ih) + (b_ih + b_hh)  # [seq, batch, hidden]

    # Zero-pad everything to full hardware tiles (padding is exact: padded
    # rows/cols of P / W_hh / W_fc are zero, so padded h lanes stay 0).
    p_pad = jnp.zeros((seq_len, b_pad, h_pad), jnp.float32)
    p_pad = p_pad.at[:, :batch, :hidden].set(p.astype(jnp.float32))
    whh_t_pad = jnp.zeros((h_pad, h_pad), jnp.float32).at[:hidden, :hidden].set(w_hh.T)
    wfc_t_pad = jnp.zeros((h_pad, c_pad), jnp.float32).at[:hidden, :num_classes].set(w_fc.T)
    bfc_pad = jnp.zeros((1, c_pad), jnp.float32).at[0, :num_classes].set(b_fc)

    out_pad = pl.pallas_call(
        rnn_fc_kernel,
        out_shape=jax.ShapeDtypeStruct((b_pad, c_pad), jnp.float32),
        in_specs=[pl.BlockSpec(memory_space=pltpu.MemorySpace.VMEM)] * 4,
        out_specs=pl.BlockSpec(memory_space=pltpu.MemorySpace.VMEM),
    )(p_pad, whh_t_pad, wfc_t_pad, bfc_pad)

    return out_pad[:batch, :num_classes]


def init_params(key, vocab_size, emb_size, hidden_size, num_classes):
    ks = jax.random.split(key, 7)
    k = 1.0 / jnp.sqrt(hidden_size)
    return {
        "emb": jax.random.normal(ks[0], (vocab_size, emb_size), jnp.float32),
        "w_ih": jax.random.uniform(ks[1], (hidden_size, emb_size), jnp.float32, -k, k),
        "w_hh": jax.random.uniform(ks[2], (hidden_size, hidden_size), jnp.float32, -k, k),
        "b_ih": jax.random.uniform(ks[3], (hidden_size,), jnp.float32, -k, k),
        "b_hh": jax.random.uniform(ks[4], (hidden_size,), jnp.float32, -k, k),
        "w_fc": jax.random.uniform(ks[5], (num_classes, hidden_size), jnp.float32, -k, k),
        "b_fc": jax.random.uniform(ks[6], (num_classes,), jnp.float32, -k, k),
    }


def reference_forward(x_ids, params):
    """Pure-JAX reference matching nn.Embedding -> nn.RNN(relu) -> out[-1] -> nn.Linear."""
    x = jnp.take(params["emb"], x_ids, axis=0)            # [batch, seq, emb]
    x = jnp.transpose(x, (1, 0, 2))                       # [seq, batch, emb]
    batch = x.shape[1]
    hidden = params["w_hh"].shape[0]
    h = jnp.zeros((batch, hidden), jnp.float32)

    def step(h, x_t):
        h = jax.nn.relu(x_t @ params["w_ih"].T + params["b_ih"]
                        + h @ params["w_hh"].T + params["b_hh"])
        return h, h

    h_last, _ = jax.lax.scan(step, h, x)
    return h_last @ params["w_fc"].T + params["b_fc"]


if __name__ == "__main__":
    vocab_size, emb_size, hidden_size, num_classes = 50, 32, 32, 4
    batch, seq_len = 2, 8

    key = jax.random.PRNGKey(0)
    kp, kx = jax.random.split(key)
    params = init_params(kp, vocab_size, emb_size, hidden_size, num_classes)
    x_ids = jax.random.randint(kx, (batch, seq_len), 0, vocab_size, dtype=jnp.int32)

    pred = rnn_forward(x_ids, params)
    pred = jax.block_until_ready(pred)

    ref = reference_forward(x_ids, params)
    assert pred.shape == (batch, num_classes)
    assert jnp.allclose(pred, ref, atol=1e-4, rtol=1e-4), (pred, ref)
    print("KERNEL_OK")
</pallas_src>

<mosaic_0001>
module attributes {stable_mosaic.version = 11 : i64} {
  func.func @rnn_fc_kernel(%arg0: memref<8x8x128xf32, #tpu.memory_space<vmem>>, %arg1: memref<128x128xf32, #tpu.memory_space<vmem>>, %arg2: memref<128x128xf32, #tpu.memory_space<vmem>>, %arg3: memref<1x128xf32, #tpu.memory_space<vmem>>, %arg4: memref<8x128xf32, #tpu.memory_space<vmem>>) attributes {dimension_semantics = [], scalar_prefetch = 0 : i64, scratch_operands = 0 : i64, tpu.core_type = #tpu.core_type<tc>} {
    %c0 = arith.constant 0 : index
    %c0_0 = arith.constant 0 : index
    %0 = vector.load %arg1[%c0, %c0_0] : memref<128x128xf32, #tpu.memory_space<vmem>>, vector<128x128xf32>
    %cst = arith.constant 0.000000e+00 : f32
    %1 = vector.broadcast %cst : f32 to vector<8x128xf32>
    %c0_i32 = arith.constant 0 : i32
    %2 = arith.index_cast %c0_i32 : i32 to index
    %c0_1 = arith.constant 0 : index
    %c0_2 = arith.constant 0 : index
    %3 = vector.load %arg0[%2, %c0_1, %c0_2] : memref<8x8x128xf32, #tpu.memory_space<vmem>>, vector<1x8x128xf32>
    %4 = vector.shape_cast %3 : vector<1x8x128xf32> to vector<8x128xf32>
    %cst_3 = arith.constant dense<0.000000e+00> : vector<8x128xf32>
    %5 = tpu.matmul %1, %0, %cst_3 {dimension_numbers = #tpu.dot_dimension_numbers<[1], [0], [0], [1], [0, 0, 1, 1], [], []>} : vector<8x128xf32>, vector<128x128xf32>, vector<8x128xf32> -> vector<8x128xf32>
    %6 = arith.addf %4, %5 : vector<8x128xf32>
    %cst_4 = arith.constant 0.000000e+00 : f32
    %7 = vector.broadcast %cst_4 : f32 to vector<8x128xf32>
    %8 = arith.maximumf %6, %7 : vector<8x128xf32>
    %c1_i32 = arith.constant 1 : i32
    %9 = arith.index_cast %c1_i32 : i32 to index
    %c0_5 = arith.constant 0 : index
    %c0_6 = arith.constant 0 : index
    %10 = vector.load %arg0[%9, %c0_5, %c0_6] : memref<8x8x128xf32, #tpu.memory_space<vmem>>, vector<1x8x128xf32>
    %11 = vector.shape_cast %10 : vector<1x8x128xf32> to vector<8x128xf32>
    %cst_7 = arith.constant dense<0.000000e+00> : vector<8x128xf32>
    %12 = tpu.matmul %8, %0, %cst_7 {dimension_numbers = #tpu.dot_dimension_numbers<[1], [0], [0], [1], [0, 0, 1, 1], [], []>} : vector<8x128xf32>, vector<128x128xf32>, vector<8x128xf32> -> vector<8x128xf32>
    %13 = arith.addf %11, %12 : vector<8x128xf32>
    %cst_8 = arith.constant 0.000000e+00 : f32
    %14 = vector.broadcast %cst_8 : f32 to vector<8x128xf32>
    %15 = arith.maximumf %13, %14 : vector<8x128xf32>
    %c2_i32 = arith.constant 2 : i32
    %16 = arith.index_cast %c2_i32 : i32 to index
    %c0_9 = arith.constant 0 : index
    %c0_10 = arith.constant 0 : index
    %17 = vector.load %arg0[%16, %c0_9, %c0_10] : memref<8x8x128xf32, #tpu.memory_space<vmem>>, vector<1x8x128xf32>
    %18 = vector.shape_cast %17 : vector<1x8x128xf32> to vector<8x128xf32>
    %cst_11 = arith.constant dense<0.000000e+00> : vector<8x128xf32>
    %19 = tpu.matmul %15, %0, %cst_11 {dimension_numbers = #tpu.dot_dimension_numbers<[1], [0], [0], [1], [0, 0, 1, 1], [], []>} : vector<8x128xf32>, vector<128x128xf32>, vector<8x128xf32> -> vector<8x128xf32>
    %20 = arith.addf %18, %19 : vector<8x128xf32>
    %cst_12 = arith.constant 0.000000e+00 : f32
    %21 = vector.broadcast %cst_12 : f32 to vector<8x128xf32>
    %22 = arith.maximumf %20, %21 : vector<8x128xf32>
    %c3_i32 = arith.constant 3 : i32
    %23 = arith.index_cast %c3_i32 : i32 to index
    %c0_13 = arith.constant 0 : index
    %c0_14 = arith.constant 0 : index
    %24 = vector.load %arg0[%23, %c0_13, %c0_14] : memref<8x8x128xf32, #tpu.memory_space<vmem>>, vector<1x8x128xf32>
    %25 = vector.shape_cast %24 : vector<1x8x128xf32> to vector<8x128xf32>
    %cst_15 = arith.constant dense<0.000000e+00> : vector<8x128xf32>
    %26 = tpu.matmul %22, %0, %cst_15 {dimension_numbers = #tpu.dot_dimension_numbers<[1], [0], [0], [1], [0, 0, 1, 1], [], []>} : vector<8x128xf32>, vector<128x128xf32>, vector<8x128xf32> -> vector<8x128xf32>
    %27 = arith.addf %25, %26 : vector<8x128xf32>
    %cst_16 = arith.constant 0.000000e+00 : f32
    %28 = vector.broadcast %cst_16 : f32 to vector<8x128xf32>
    %29 = arith.maximumf %27, %28 : vector<8x128xf32>
    %c4_i32 = arith.constant 4 : i32
    %30 = arith.index_cast %c4_i32 : i32 to index
    %c0_17 = arith.constant 0 : index
    %c0_18 = arith.constant 0 : index
    %31 = vector.load %arg0[%30, %c0_17, %c0_18] : memref<8x8x128xf32, #tpu.memory_space<vmem>>, vector<1x8x128xf32>
    %32 = vector.shape_cast %31 : vector<1x8x128xf32> to vector<8x128xf32>
    %cst_19 = arith.constant dense<0.000000e+00> : vector<8x128xf32>
    %33 = tpu.matmul %29, %0, %cst_19 {dimension_numbers = #tpu.dot_dimension_numbers<[1], [0], [0], [1], [0, 0, 1, 1], [], []>} : vector<8x128xf32>, vector<128x128xf32>, vector<8x128xf32> -> vector<8x128xf32>
    %34 = arith.addf %32, %33 : vector<8x128xf32>
    %cst_20 = arith.constant 0.000000e+00 : f32
    %35 = vector.broadcast %cst_20 : f32 to vector<8x128xf32>
    %36 = arith.maximumf %34, %35 : vector<8x128xf32>
    %c5_i32 = arith.constant 5 : i32
    %37 = arith.index_cast %c5_i32 : i32 to index
    %c0_21 = arith.constant 0 : index
    %c0_22 = arith.constant 0 : index
    %38 = vector.load %arg0[%37, %c0_21, %c0_22] : memref<8x8x128xf32, #tpu.memory_space<vmem>>, vector<1x8x128xf32>
    %39 = vector.shape_cast %38 : vector<1x8x128xf32> to vector<8x128xf32>
    %cst_23 = arith.constant dense<0.000000e+00> : vector<8x128xf32>
    %40 = tpu.matmul %36, %0, %cst_23 {dimension_numbers = #tpu.dot_dimension_numbers<[1], [0], [0], [1], [0, 0, 1, 1], [], []>} : vector<8x128xf32>, vector<128x128xf32>, vector<8x128xf32> -> vector<8x128xf32>
    %41 = arith.addf %39, %40 : vector<8x128xf32>
    %cst_24 = arith.constant 0.000000e+00 : f32
    %42 = vector.broadcast %cst_24 : f32 to vector<8x128xf32>
    %43 = arith.maximumf %41, %42 : vector<8x128xf32>
    %c6_i32 = arith.constant 6 : i32
    %44 = arith.index_cast %c6_i32 : i32 to index
    %c0_25 = arith.constant 0 : index
    %c0_26 = arith.constant 0 : index
    %45 = vector.load %arg0[%44, %c0_25, %c0_26] : memref<8x8x128xf32, #tpu.memory_space<vmem>>, vector<1x8x128xf32>
    %46 = vector.shape_cast %45 : vector<1x8x128xf32> to vector<8x128xf32>
    %cst_27 = arith.constant dense<0.000000e+00> : vector<8x128xf32>
    %47 = tpu.matmul %43, %0, %cst_27 {dimension_numbers = #tpu.dot_dimension_numbers<[1], [0], [0], [1], [0, 0, 1, 1], [], []>} : vector<8x128xf32>, vector<128x128xf32>, vector<8x128xf32> -> vector<8x128xf32>
    %48 = arith.addf %46, %47 : vector<8x128xf32>
    %cst_28 = arith.constant 0.000000e+00 : f32
    %49 = vector.broadcast %cst_28 : f32 to vector<8x128xf32>
    %50 = arith.maximumf %48, %49 : vector<8x128xf32>
    %c7_i32 = arith.constant 7 : i32
    %51 = arith.index_cast %c7_i32 : i32 to index
    %c0_29 = arith.constant 0 : index
    %c0_30 = arith.constant 0 : index
    %52 = vector.load %arg0[%51, %c0_29, %c0_30] : memref<8x8x128xf32, #tpu.memory_space<vmem>>, vector<1x8x128xf32>
    %53 = vector.shape_cast %52 : vector<1x8x128xf32> to vector<8x128xf32>
    %cst_31 = arith.constant dense<0.000000e+00> : vector<8x128xf32>
    %54 = tpu.matmul %50, %0, %cst_31 {dimension_numbers = #tpu.dot_dimension_numbers<[1], [0], [0], [1], [0, 0, 1, 1], [], []>} : vector<8x128xf32>, vector<128x128xf32>, vector<8x128xf32> -> vector<8x128xf32>
    %55 = arith.addf %53, %54 : vector<8x128xf32>
    %cst_32 = arith.constant 0.000000e+00 : f32
    %56 = vector.broadcast %cst_32 : f32 to vector<8x128xf32>
    %57 = arith.maximumf %55, %56 : vector<8x128xf32>
    %c8_i32 = arith.constant 8 : i32
    %c0_33 = arith.constant 0 : index
    %c0_34 = arith.constant 0 : index
    %58 = vector.load %arg2[%c0_33, %c0_34] : memref<128x128xf32, #tpu.memory_space<vmem>>, vector<128x128xf32>
    %cst_35 = arith.constant dense<0.000000e+00> : vector<8x128xf32>
    %59 = tpu.matmul %57, %58, %cst_35 {dimension_numbers = #tpu.dot_dimension_numbers<[1], [0], [0], [1], [0, 0, 1, 1], [], []>} : vector<8x128xf32>, vector<128x128xf32>, vector<8x128xf32> -> vector<8x128xf32>
    %c0_36 = arith.constant 0 : index
    %c0_37 = arith.constant 0 : index
    %60 = vector.load %arg3[%c0_36, %c0_37] : memref<1x128xf32, #tpu.memory_space<vmem>>, vector<1x128xf32>
    %61 = vector.broadcast %60 : vector<1x128xf32> to vector<8x128xf32>
    %62 = arith.addf %59, %61 : vector<8x128xf32>
    %c0_38 = arith.constant 0 : index
    %c0_39 = arith.constant 0 : index
    %63 = vector.load %arg4[%c0_38, %c0_39] : memref<8x128xf32, #tpu.memory_space<vmem>>, vector<8x128xf32>
    tpu.vector_store %arg4[%c0_38, %c0_39], %62 {strides = array<i32>} : memref<8x128xf32, #tpu.memory_space<vmem>>, vector<8x128xf32>,
    return
  }
}

</mosaic_0001>

<bundles_post_ra>
// kernel: tpu_custom_call.1
= control target key start
LH: loop header
LB: loop body
LE: loop exit
PB: predicated region body
PF: predicated region fallthrough
CT: control target
= control target key end

     0   :  { %9 = vsyncpa [#allocation3], 0  ;;  %s1710_s0 = inlined_call_operand.hbm [shape: f32[8,8,128], index: 0, kind: input, shape index: {}]   ;;  %s1711_s1 = inlined_call_operand.hbm [shape: f32[128,128], index: 1, kind: input, shape index: {}]   ;;  %s1712_s2 = inlined_call_operand.hbm [shape: f32[128,128], index: 2, kind: input, shape index: {}]   ;;  %s1713_s3 = inlined_call_operand.vmem [shape: f32[1,128], index: 3, kind: input, shape index: {}]   ;;  %s1714_s4 = inlined_call_operand.hbm [shape: f32[8,128], index: 4, kind: output, shape index: {}]  }
   0x1   :  { %10 = vsyncpa [#allocation6], 0 }
   0x2   :  { %11 = vsyncpa [#allocation4], 0  ;;  %s1339_s15 = smov [#allocation5]   ;;  %s1340_s17 = smov [#allocation2]  }
   0x3   :  { %s29_s16 = sshll.u32 %s1339_s15, 4  ;;  %s17_s18 = sshll.u32 %s1340_s17, 4  ;;  %s30_s16 = int_to_ptr.vmem [resolvable:$true] %s29_s16  ;;  %s18_s18 = int_to_ptr.vmem [resolvable:$true] %s17_s18 }
   0x4   :  { %s1261_s19 = scalar_lea.vmem %s30_s16, 2048  ;;  %p1266_p1 = scmp.lt.s32.totalorder %s30_s16, %s30_s16 }
   0x5   :  { %p1262_p0 = scmp.ne.s32.totalorder %s30_s16, %s1261_s19  ;;  %p1267_p2 = scmp.lt.s32.totalorder %s1261_s19, %s1261_s19 }
   0x7   :  { %p1268_p3 = por %p1267_p2, %p1266_p1 }
   0x9   :  { %p1269_p4 = pnand %p1268_p3, %p1262_p0 }
   0xb   :  { %1272 = shalt.err (!%p1269_p4)
}
   0xc   :  { %s1341_s20 = smov 128   ;;  %s1342_s21 = smov 8  }
   0xd   :  { %35 = dma.hbm_to_vmem [thread:$0]  %s1711_s1, 2048, %s30_s16, [#allocation6], %s1341_s20, %s1341_s20, %s1342_s21  }
   0xe   :  { %s1281_s24 = scalar_lea.vmem %s18_s18, 1024  ;;  %p1286_p6 = scmp.lt.s32.totalorder %s18_s18, %s18_s18 }
   0xf   :  { %p1282_p5 = scmp.ne.s32.totalorder %s18_s18, %s1281_s24  ;;  %p1287_p7 = scmp.lt.s32.totalorder %s1281_s24, %s1281_s24 }
  0x11   :  { %p1288_p8 = por %p1287_p7, %p1286_p6 }
  0x13   :  { %p1289_p9 = pnand %p1288_p8, %p1282_p5 }
  0x15   :  { %1292 = shalt.err (!%p1289_p9)
}
  0x16   :  { %23 = dma.hbm_to_vmem [thread:$0]  %s1710_s0, 1024, %s18_s18, [#allocation3], %s1341_s20, %s1341_s20, %s1342_s21  }
  0x17   :  { %s1343_s27 = smov [#allocation7]  }
  0x18   :  { %s41_s28 = sshll.u32 %s1343_s27, 4  ;;  %s42_s28 = int_to_ptr.vmem [resolvable:$true] %s41_s28 }
  0x19   :  { %s1301_s29 = scalar_lea.vmem %s42_s28, 2048  ;;  %p1306_p11 = scmp.lt.s32.totalorder %s42_s28, %s42_s28 }
  0x1a   :  { %p1302_p10 = scmp.ne.s32.totalorder %s42_s28, %s1301_s29  ;;  %p1307_p12 = scmp.lt.s32.totalorder %s1301_s29, %s1301_s29 }
  0x1c   :  { %p1308_p13 = por %p1307_p12, %p1306_p11 }
  0x1e   :  { %p1309_p0 = pnand %p1308_p13, %p1302_p10 }
  0x20   :  { %1312 = shalt.err (!%p1309_p0)
}
  0x21   :  { %47 = dma.hbm_to_vmem [thread:$0]  %s1712_s2, 2048, %s42_s28, [#allocation6], %s1341_s20, %s1341_s20, %s1342_s21  }
  0x22   :  { %1333 = dma.done.wait [#allocation3], 1024  }
  0x23   :  { %1334 = vsyncadd [#allocation3], 4294966272 }
  0x24   :  { %1335 = dma.done.wait [#allocation6], 4096  }
  0x25   :  { %1336 = vsyncadd [#allocation6], 4294963200  ;;  %v1344_v0 = vmov 0.0   ;;  %vm1345_vm0 = vmmov 0   ;;  %v1387_v1 = vld [vmem:[#allocation5 + $0x78] sm:$0xff]  ;;  %v1389_v2 = vld [vmem:[#allocation5 + $0x70] sm:$0xff] }
  0x26   :  { %930 = vmatprep.subr.mxu0 %v1344_v0  ;;  %962 = vmatprep.mubr.msk.f32.mxu0 %vm1345_vm0, %v1344_v0  ;;  %v1394_v3 = vld [vmem:[#allocation5 + $0x68] sm:$0xff]  ;;  %v1400_v4 = vld [vmem:[#allocation5 + $0x60] sm:$0xff]  ;;  %v1406_v5 = vld [vmem:[#allocation5 + $0x58] sm:$0xff]  ;;  %s1346_s5 = smov [#allocation8]  }
  0x27   :  { %965 = vmatprep.subr.mxu1 %v1344_v0  ;;  %997 = vmatprep.mubr.msk.f32.mxu1 %vm1345_vm0, %v1344_v0  ;;  %v1412_v6 = vld [vmem:[#allocation5 + $0x50] sm:$0xff]  ;;  %v1418_v7 = vld [vmem:[#allocation5 + $0x48] sm:$0xff]  ;;  %v1424_v8 = vld [vmem:[#allocation5 + $0x40] sm:$0xff]  ;;  %s766_s6 = sshll.u32 %s1346_s5, 4  ;;  %s767_s6 = int_to_ptr.vmem [resolvable:$true] %s766_s6 }
  0x28   :  { %931 = vmatpush3.msra.mxu0 %v1387_v1  ;;  %966 = vmatpush3.msra.mxu1 %v1387_v1  ;;  %v1430_v9 = vld [vmem:[#allocation5 + $0x38] sm:$0xff]  ;;  %v1436_v10 = vld [vmem:[#allocation5 + $0x30] sm:$0xff]  ;;  %v1442_v11 = vld [vmem:[#allocation5 + $0x28] sm:$0xff]  ;;  %s1313_s7 = scalar_lea.vmem %s767_s6, 128  ;;  %p1318_p2 = scmp.lt.s32.totalorder %s767_s6, %s767_s6 }
  0x29   :  { %932 = vmatprep.subr.mxu0 %v1344_v0  ;;  %967 = vmatprep.subr.mxu1 %v1344_v0  ;;  %v1448_v12 = vld [vmem:[#allocation5 + $0x20] sm:$0xff]  ;;  %v1454_v13 = vld [vmem:[#allocation5 + $0x18] sm:$0xff]  ;;  %v1460_v14 = vld [vmem:[#allocation5 + $0x10] sm:$0xff]  ;;  %p1314_p1 = scmp.ne.s32.totalorder %s767_s6, %s1313_s7  ;;  %p1319_p3 = scmp.lt.s32.totalorder %s1313_s7, %s1313_s7 }
  0x2a   :  { %933 = vmatpush3.msra.mxu0 %v1389_v2  ;;  %968 = vmatpush3.msra.mxu1 %v1389_v2  ;;  %v1466_v15 = vld [vmem:[#allocation5 + $0x8] sm:$0xff]  ;;  %v1472_v16 = vld [vmem:[#allocation5] sm:$0xff]  ;;  %v223_v27 = vld [vmem:[#allocation2 + $0x10] sm:$0xff] }
  0x2b   :  { %934 = vmatprep.subr.mxu0 %v1344_v0  ;;  %969 = vmatprep.subr.mxu1 %v1344_v0  ;;  %v75_v17 = vld [vmem:[#allocation2] sm:$0xff]  ;;  %v149_v22 = vld [vmem:[#allocation2 + $0x8] sm:$0xff]  ;;  %v297_v32 = vld [vmem:[#allocation2 + $0x18] sm:$0xff]  ;;  %p1320_p4 = por %p1319_p3, %p1318_p2 }
  0x2c   :  { %935 = vmatpush3.msra.mxu0 %v1394_v3  ;;  %970 = vmatpush3.msra.mxu1 %v1394_v3  ;;  %v371_v37 = vld [vmem:[#allocation2 + $0x20] sm:$0xff]  ;;  %v445_v42 = vld [vmem:[#allocation2 + $0x28] sm:$0xff]  ;;  %v681_v47 = vld [vmem:[#allocation7 + $0x78] sm:$0xff] }
  0x2d   :  { %936 = vmatprep.subr.mxu0 %v1344_v0  ;;  %971 = vmatprep.subr.mxu1 %v1344_v0  ;;  %v680_v48 = vld [vmem:[#allocation7 + $0x70] sm:$0xff]  ;;  %v679_v49 = vld [vmem:[#allocation7 + $0x68] sm:$0xff]  ;;  %v678_v50 = vld [vmem:[#allocation7 + $0x60] sm:$0xff]  ;;  %p1321_p5 = pnand %p1320_p4, %p1314_p1 }
  0x2e   :  { %937 = vmatpush3.msra.mxu0 %v1400_v4  ;;  %972 = vmatpush3.msra.mxu1 %v1400_v4  ;;  %v677_v51 = vld [vmem:[#allocation7 + $0x58] sm:$0xff]  ;;  %v676_v52 = vld [vmem:[#allocation7 + $0x50] sm:$0xff]  ;;  %v675_v53 = vld [vmem:[#allocation7 + $0x48] sm:$0xff] }
  0x2f   :  { %938 = vmatprep.subr.mxu0 %v1344_v0  ;;  %973 = vmatprep.subr.mxu1 %v1344_v0  ;;  %v674_v54 = vld [vmem:[#allocation7 + $0x40] sm:$0xff]  ;;  %v673_v55 = vld [vmem:[#allocation7 + $0x38] sm:$0xff]  ;;  %v672_v56 = vld [vmem:[#allocation7 + $0x30] sm:$0xff] }
  0x30   :  { %939 = vmatpush3.msra.mxu0 %v1406_v5  ;;  %974 = vmatpush3.msra.mxu1 %v1406_v5  ;;  %v671_v57 = vld [vmem:[#allocation7 + $0x28] sm:$0xff]  ;;  %v670_v58 = vld [vmem:[#allocation7 + $0x20] sm:$0xff]  ;;  %v669_v59 = vld [vmem:[#allocation7 + $0x18] sm:$0xff] }
  0x31   :  { %940 = vmatprep.subr.mxu0 %v1344_v0  ;;  %975 = vmatprep.subr.mxu1 %v1344_v0  ;;  %v519_v60 = vld [vmem:[#allocation2 + $0x30] sm:$0xff] }
  0x32   :  { %941 = vmatpush3.msra.mxu0 %v1412_v6  ;;  %976 = vmatpush3.msra.mxu1 %v1412_v6 }
  0x33   :  { %942 = vmatprep.subr.mxu0 %v1344_v0  ;;  %977 = vmatprep.subr.mxu1 %v1344_v0 }
  0x34   :  { %943 = vmatpush3.msra.mxu0 %v1418_v7  ;;  %978 = vmatpush3.msra.mxu1 %v1418_v7 }
  0x35   :  { %944 = vmatprep.subr.mxu0 %v1344_v0  ;;  %979 = vmatprep.subr.mxu1 %v1344_v0 }
  0x36   :  { %945 = vmatpush3.msra.mxu0 %v1424_v8  ;;  %980 = vmatpush3.msra.mxu1 %v1424_v8 }
  0x37   :  { %946 = vmatprep.subr.mxu0 %v1344_v0  ;;  %981 = vmatprep.subr.mxu1 %v1344_v0 }
  0x38   :  { %947 = vmatpush3.msra.mxu0 %v1430_v9  ;;  %982 = vmatpush3.msra.mxu1 %v1430_v9 }
  0x39   :  { %948 = vmatprep.subr.mxu0 %v1344_v0  ;;  %983 = vmatprep.subr.mxu1 %v1344_v0 }
  0x3a   :  { %949 = vmatpush3.msra.mxu0 %v1436_v10  ;;  %984 = vmatpush3.msra.mxu1 %v1436_v10 }
  0x3b   :  { %950 = vmatprep.subr.mxu0 %v1344_v0  ;;  %985 = vmatprep.subr.mxu1 %v1344_v0 }
  0x3c   :  { %951 = vmatpush3.msra.mxu0 %v1442_v11  ;;  %986 = vmatpush3.msra.mxu1 %v1442_v11 }
  0x3d   :  { %952 = vmatprep.subr.mxu0 %v1344_v0  ;;  %987 = vmatprep.subr.mxu1 %v1344_v0 }
  0x3e   :  { %953 = vmatpush3.msra.mxu0 %v1448_v12  ;;  %988 = vmatpush3.msra.mxu1 %v1448_v12 }
  0x3f   :  { %954 = vmatprep.subr.mxu0 %v1344_v0  ;;  %989 = vmatprep.subr.mxu1 %v1344_v0 }
  0x40   :  { %955 = vmatpush3.msra.mxu0 %v1454_v13  ;;  %990 = vmatpush3.msra.mxu1 %v1454_v13 }
  0x41   :  { %956 = vmatprep.subr.mxu0 %v1344_v0  ;;  %991 = vmatprep.subr.mxu1 %v1344_v0 }
  0x42   :  { %957 = vmatpush3.msra.mxu0 %v1460_v14  ;;  %992 = vmatpush3.msra.mxu1 %v1460_v14 }
  0x43   :  { %958 = vmatprep.subr.mxu0 %v1344_v0  ;;  %993 = vmatprep.subr.mxu1 %v1344_v0 }
  0x44   :  { %959 = vmatpush3.msra.mxu0 %v1466_v15  ;;  %994 = vmatpush3.msra.mxu1 %v1466_v15 }
  0x45   :  { %960 = vmatprep.subr.mxu0 %v1344_v0  ;;  %995 = vmatprep.subr.mxu1 %v1344_v0 }
  0x46   :  { %961 = vmatpush3.msra.mxu0 %v1472_v16  ;;  %996 = vmatpush3.msra.mxu1 %v1472_v16 }
  0x47   :  { %963 = vmatmul.mubr.f32.vlgmr.msra.gmra.mxu0 %v1344_v0  ;;  %1000 = vmatprep.subr.mxu0 %v1344_v0 }
  0x48   :  { %1001 = vmatpush3.msra.mxu0 %v1387_v1  ;;  %1032 = vmatprep.mubr.msk.f32.mxu0 %vm1345_vm0, %v1344_v0 }
  0x49   :  { %1002 = vmatprep.subr.mxu0 %v1344_v0  ;;  %1035 = vmatprep.subr.mxu1 %v1344_v0 }
  0x4a   :  { %1003 = vmatpush3.msra.mxu0 %v1389_v2 }
  0x4b   :  { %1004 = vmatprep.subr.mxu0 %v1344_v0 }
  0x4c   :  { %1005 = vmatpush3.msra.mxu0 %v1394_v3 }
  0x4d   :  { %1006 = vmatprep.subr.mxu0 %v1344_v0 }
  0x4e   :  { %1007 = vmatpush3.msra.mxu0 %v1400_v4 }
  0x4f   :  { %1008 = vmatprep.subr.mxu0 %v1344_v0 }
  0x50   :  { %1009 = vmatpush3.msra.mxu0 %v1406_v5 }
  0x51   :  { %1010 = vmatprep.subr.mxu0 %v1344_v0 }
  0x52   :  { %1011 = vmatpush3.msra.mxu0 %v1412_v6 }
  0x53   :  { %1012 = vmatprep.subr.mxu0 %v1344_v0 }
  0x54   :  { %1013 = vmatpush3.msra.mxu0 %v1418_v7 }
  0x55   :  { %1014 = vmatprep.subr.mxu0 %v1344_v0 }
  0x56   :  { %1015 = vmatpush3.msra.mxu0 %v1424_v8 }
  0x57   :  { %1016 = vmatprep.subr.mxu0 %v1344_v0 }
  0x58   :  { %1017 = vmatpush3.msra.mxu0 %v1430_v9 }
  0x59   :  { %1018 = vmatprep.subr.mxu0 %v1344_v0 }
  0x5a   :  { %1019 = vmatpush3.msra.mxu0 %v1436_v10 }
  0x5b   :  { %1020 = vmatprep.subr.mxu0 %v1344_v0 }
  0x5c   :  { %1021 = vmatpush3.msra.mxu0 %v1442_v11 }
  0x5d   :  { %1022 = vmatprep.subr.mxu0 %v1344_v0 }
  0x5e   :  { %1023 = vmatpush3.msra.mxu0 %v1448_v12 }
  0x5f   :  { %1024 = vmatprep.subr.mxu0 %v1344_v0 }
  0x60   :  { %1025 = vmatpush3.msra.mxu0 %v1454_v13 }
  0x61   :  { %1026 = vmatprep.subr.mxu0 %v1344_v0 }
  0x62   :  { %1027 = vmatpush3.msra.mxu0 %v1460_v14 }
  0x63   :  { %1028 = vmatprep.subr.mxu0 %v1344_v0 }
  0x64   :  { %1029 = vmatpush3.msra.mxu0 %v1466_v15 }
  0x65   :  { %1030 = vmatprep.subr.mxu0 %v1344_v0 }
  0x66   :  { %1031 = vmatpush3.msra.mxu0 %v1472_v16 }
  0x67   :  { %1070 = vmatprep.subr.mxu0 %v1344_v0 }
 0x107   :  { %v142_v18 = vpop.f32.mrf.mxu0 }
 0x108   :  { %v146_v19 = vadd.f32 %v142_v18, %v75_v17 }
 0x109   :  { %v964_v20 = vpop.f32.mrf.mxu0 }
 0x10a   :  { %v147_v21 = vmax.f32 %v146_v19, 0.0 }
 0x10c   :  { %998 = vmatmul.mubr.f32.vlgmr.msra.gmra.mxu1 %v147_v21 }
 0x10d   :  { %1036 = vmatpush3.msra.mxu1 %v1387_v1  ;;  %1067 = vmatprep.mubr.msk.f32.mxu1 %vm1345_vm0, %v1344_v0 }
 0x10e   :  { %1037 = vmatprep.subr.mxu1 %v1344_v0 }
 0x10f   :  { %1038 = vmatpush3.msra.mxu1 %v1389_v2 }
 0x110   :  { %1039 = vmatprep.subr.mxu1 %v1344_v0 }
 0x111   :  { %1040 = vmatpush3.msra.mxu1 %v1394_v3 }
 0x112   :  { %1041 = vmatprep.subr.mxu1 %v1344_v0 }
 0x113   :  { %1042 = vmatpush3.msra.mxu1 %v1400_v4 }
 0x114   :  { %1043 = vmatprep.subr.mxu1 %v1344_v0 }
 0x115   :  { %1044 = vmatpush3.msra.mxu1 %v1406_v5 }
 0x116   :  { %1045 = vmatprep.subr.mxu1 %v1344_v0 }
 0x117   :  { %1046 = vmatpush3.msra.mxu1 %v1412_v6 }
 0x118   :  { %1047 = vmatprep.subr.mxu1 %v1344_v0 }
 0x119   :  { %1048 = vmatpush3.msra.mxu1 %v1418_v7 }
 0x11a   :  { %1049 = vmatprep.subr.mxu1 %v1344_v0 }
 0x11b   :  { %1050 = vmatpush3.msra.mxu1 %v1424_v8 }
 0x11c   :  { %1051 = vmatprep.subr.mxu1 %v1344_v0 }
 0x11d   :  { %1052 = vmatpush3.msra.mxu1 %v1430_v9 }
 0x11e   :  { %1053 = vmatprep.subr.mxu1 %v1344_v0 }
 0x11f   :  { %1054 = vmatpush3.msra.mxu1 %v1436_v10 }
 0x120   :  { %1055 = vmatprep.subr.mxu1 %v1344_v0 }
 0x121   :  { %1056 = vmatpush3.msra.mxu1 %v1442_v11 }
 0x122   :  { %1057 = vmatprep.subr.mxu1 %v1344_v0 }
 0x123   :  { %1058 = vmatpush3.msra.mxu1 %v1448_v12 }
 0x124   :  { %1059 = vmatprep.subr.mxu1 %v1344_v0 }
 0x125   :  { %1060 = vmatpush3.msra.mxu1 %v1454_v13 }
 0x126   :  { %1061 = vmatprep.subr.mxu1 %v1344_v0 }
 0x127   :  { %1062 = vmatpush3.msra.mxu1 %v1460_v14 }
 0x128   :  { %1063 = vmatprep.subr.mxu1 %v1344_v0 }
 0x129   :  { %1064 = vmatpush3.msra.mxu1 %v1466_v15 }
 0x12a   :  { %1065 = vmatprep.subr.mxu1 %v1344_v0 }
 0x12b   :  { %1066 = vmatpush3.msra.mxu1 %v1472_v16 }
 0x12c   :  { %1105 = vmatprep.subr.mxu1 %v1344_v0 }
 0x1cc   :  { %v216_v23 = vpop.f32.mrf.mxu1 }
 0x1cd   :  { %v220_v24 = vadd.f32 %v216_v23, %v149_v22 }
 0x1ce   :  { %v999_v25 = vpop.f32.mrf.mxu1 }
 0x1cf   :  { %v221_v26 = vmax.f32 %v220_v24, 0.0 }
 0x1d1   :  { %1033 = vmatmul.mubr.f32.vlgmr.msra.gmra.mxu0 %v221_v26 }
 0x1d2   :  { %1071 = vmatpush3.msra.mxu0 %v1387_v1  ;;  %1102 = vmatprep.mubr.msk.f32.mxu0 %vm1345_vm0, %v1344_v0 }
 0x1d3   :  { %1072 = vmatprep.subr.mxu0 %v1344_v0 }
 0x1d4   :  { %1073 = vmatpush3.msra.mxu0 %v1389_v2 }
 0x1d5   :  { %1074 = vmatprep.subr.mxu0 %v1344_v0 }
 0x1d6   :  { %1075 = vmatpush3.msra.mxu0 %v1394_v3 }
 0x1d7   :  { %1076 = vmatprep.subr.mxu0 %v1344_v0 }
 0x1d8   :  { %1077 = vmatpush3.msra.mxu0 %v1400_v4 }
 0x1d9   :  { %1078 = vmatprep.subr.mxu0 %v1344_v0 }
 0x1da   :  { %1079 = vmatpush3.msra.mxu0 %v1406_v5 }
 0x1db   :  { %1080 = vmatprep.subr.mxu0 %v1344_v0 }
 0x1dc   :  { %1081 = vmatpush3.msra.mxu0 %v1412_v6 }
 0x1dd   :  { %1082 = vmatprep.subr.mxu0 %v1344_v0 }
 0x1de   :  { %1083 = vmatpush3.msra.mxu0 %v1418_v7 }
 0x1df   :  { %1084 = vmatprep.subr.mxu0 %v1344_v0 }
 0x1e0   :  { %1085 = vmatpush3.msra.mxu0 %v1424_v8 }
 0x1e1   :  { %1086 = vmatprep.subr.mxu0 %v1344_v0 }
 0x1e2   :  { %1087 = vmatpush3.msra.mxu0 %v1430_v9 }
 0x1e3   :  { %1088 = vmatprep.subr.mxu0 %v1344_v0 }
 0x1e4   :  { %1089 = vmatpush3.msra.mxu0 %v1436_v10 }
 0x1e5   :  { %1090 = vmatprep.subr.mxu0 %v1344_v0 }
 0x1e6   :  { %1091 = vmatpush3.msra.mxu0 %v1442_v11 }
 0x1e7   :  { %1092 = vmatprep.subr.mxu0 %v1344_v0 }
 0x1e8   :  { %1093 = vmatpush3.msra.mxu0 %v1448_v12 }
 0x1e9   :  { %1094 = vmatprep.subr.mxu0 %v1344_v0 }
 0x1ea   :  { %1095 = vmatpush3.msra.mxu0 %v1454_v13 }
 0x1eb   :  { %1096 = vmatprep.subr.mxu0 %v1344_v0 }
 0x1ec   :  { %1097 = vmatpush3.msra.mxu0 %v1460_v14 }
 0x1ed   :  { %1098 = vmatprep.subr.mxu0 %v1344_v0 }
 0x1ee   :  { %1099 = vmatpush3.msra.mxu0 %v1466_v15 }
 0x1ef   :  { %1100 = vmatprep.subr.mxu0 %v1344_v0 }
 0x1f0   :  { %1101 = vmatpush3.msra.mxu0 %v1472_v16 }
 0x1f1   :  { %1140 = vmatprep.subr.mxu0 %v1344_v0 }
 0x291   :  { %v290_v28 = vpop.f32.mrf.mxu0 }
 0x292   :  { %v294_v29 = vadd.f32 %v290_v28, %v223_v27 }
 0x293   :  { %v1034_v30 = vpop.f32.mrf.mxu0 }
 0x294   :  { %v295_v31 = vmax.f32 %v294_v29, 0.0 }
 0x296   :  { %1068 = vmatmul.mubr.f32.vlgmr.msra.gmra.mxu1 %v295_v31 }
 0x297   :  { %1106 = vmatpush3.msra.mxu1 %v1387_v1  ;;  %1137 = vmatprep.mubr.msk.f32.mxu1 %vm1345_vm0, %v1344_v0 }
 0x298   :  { %1107 = vmatprep.subr.mxu1 %v1344_v0 }
 0x299   :  { %1108 = vmatpush3.msra.mxu1 %v1389_v2 }
 0x29a   :  { %1109 = vmatprep.subr.mxu1 %v1344_v0 }
 0x29b   :  { %1110 = vmatpush3.msra.mxu1 %v1394_v3 }
 0x29c   :  { %1111 = vmatprep.subr.mxu1 %v1344_v0 }
 0x29d   :  { %1112 = vmatpush3.msra.mxu1 %v1400_v4 }
 0x29e   :  { %1113 = vmatprep.subr.mxu1 %v1344_v0 }
 0x29f   :  { %1114 = vmatpush3.msra.mxu1 %v1406_v5 }
 0x2a0   :  { %1115 = vmatprep.subr.mxu1 %v1344_v0 }
 0x2a1   :  { %1116 = vmatpush3.msra.mxu1 %v1412_v6 }
 0x2a2   :  { %1117 = vmatprep.subr.mxu1 %v1344_v0 }
 0x2a3   :  { %1118 = vmatpush3.msra.mxu1 %v1418_v7 }
 0x2a4   :  { %1119 = vmatprep.subr.mxu1 %v1344_v0 }
 0x2a5   :  { %1120 = vmatpush3.msra.mxu1 %v1424_v8 }
 0x2a6   :  { %1121 = vmatprep.subr.mxu1 %v1344_v0 }
 0x2a7   :  { %1122 = vmatpush3.msra.mxu1 %v1430_v9 }
 0x2a8   :  { %1123 = vmatprep.subr.mxu1 %v1344_v0 }
 0x2a9   :  { %1124 = vmatpush3.msra.mxu1 %v1436_v10 }
 0x2aa   :  { %1125 = vmatprep.subr.mxu1 %v1344_v0 }
 0x2ab   :  { %1126 = vmatpush3.msra.mxu1 %v1442_v11 }
 0x2ac   :  { %1127 = vmatprep.subr.mxu1 %v1344_v0 }
 0x2ad   :  { %1128 = vmatpush3.msra.mxu1 %v1448_v12 }
 0x2ae   :  { %1129 = vmatprep.subr.mxu1 %v1344_v0 }
 0x2af   :  { %1130 = vmatpush3.msra.mxu1 %v1454_v13 }
 0x2b0   :  { %1131 = vmatprep.subr.mxu1 %v1344_v0 }
 0x2b1   :  { %1132 = vmatpush3.msra.mxu1 %v1460_v14 }
 0x2b2   :  { %1133 = vmatprep.subr.mxu1 %v1344_v0 }
 0x2b3   :  { %1134 = vmatpush3.msra.mxu1 %v1466_v15 }
 0x2b4   :  { %1135 = vmatprep.subr.mxu1 %v1344_v0 }
 0x2b5   :  { %1136 = vmatpush3.msra.mxu1 %v1472_v16 }
 0x2b6   :  { %1175 = vmatprep.subr.mxu1 %v1344_v0 }
 0x356   :  { %v364_v33 = vpop.f32.mrf.mxu1 }
 0x357   :  { %v368_v34 = vadd.f32 %v364_v33, %v297_v32 }
 0x358   :  { %v1069_v35 = vpop.f32.mrf.mxu1 }
 0x359   :  { %v369_v36 = vmax.f32 %v368_v34, 0.0 }
 0x35b   :  { %1103 = vmatmul.mubr.f32.vlgmr.msra.gmra.mxu0 %v369_v36 }
 0x35c   :  { %1141 = vmatpush3.msra.mxu0 %v1387_v1  ;;  %1172 = vmatprep.mubr.msk.f32.mxu0 %vm1345_vm0, %v1344_v0 }
 0x35d   :  { %1142 = vmatprep.subr.mxu0 %v1344_v0 }
 0x35e   :  { %1143 = vmatpush3.msra.mxu0 %v1389_v2 }
 0x35f   :  { %1144 = vmatprep.subr.mxu0 %v1344_v0 }
 0x360   :  { %1145 = vmatpush3.msra.mxu0 %v1394_v3 }
 0x361   :  { %1146 = vmatprep.subr.mxu0 %v1344_v0 }
 0x362   :  { %1147 = vmatpush3.msra.mxu0 %v1400_v4 }
 0x363   :  { %1148 = vmatprep.subr.mxu0 %v1344_v0 }
 0x364   :  { %1149 = vmatpush3.msra.mxu0 %v1406_v5 }
 0x365   :  { %1150 = vmatprep.subr.mxu0 %v1344_v0 }
 0x366   :  { %1151 = vmatpush3.msra.mxu0 %v1412_v6 }
 0x367   :  { %1152 = vmatprep.subr.mxu0 %v1344_v0 }
 0x368   :  { %1153 = vmatpush3.msra.mxu0 %v1418_v7 }
 0x369   :  { %1154 = vmatprep.subr.mxu0 %v1344_v0 }
 0x36a   :  { %1155 = vmatpush3.msra.mxu0 %v1424_v8 }
 0x36b   :  { %1156 = vmatprep.subr.mxu0 %v1344_v0 }
 0x36c   :  { %1157 = vmatpush3.msra.mxu0 %v1430_v9 }
 0x36d   :  { %1158 = vmatprep.subr.mxu0 %v1344_v0 }
 0x36e   :  { %1159 = vmatpush3.msra.mxu0 %v1436_v10 }
 0x36f   :  { %1160 = vmatprep.subr.mxu0 %v1344_v0 }
 0x370   :  { %1161 = vmatpush3.msra.mxu0 %v1442_v11 }
 0x371   :  { %1162 = vmatprep.subr.mxu0 %v1344_v0 }
 0x372   :  { %1163 = vmatpush3.msra.mxu0 %v1448_v12 }
 0x373   :  { %1164 = vmatprep.subr.mxu0 %v1344_v0 }
 0x374   :  { %1165 = vmatpush3.msra.mxu0 %v1454_v13 }
 0x375   :  { %1166 = vmatprep.subr.mxu0 %v1344_v0 }
 0x376   :  { %1167 = vmatpush3.msra.mxu0 %v1460_v14 }
 0x377   :  { %1168 = vmatprep.subr.mxu0 %v1344_v0 }
 0x378   :  { %1169 = vmatpush3.msra.mxu0 %v1466_v15 }
 0x379   :  { %1170 = vmatprep.subr.mxu0 %v1344_v0 }
 0x37a   :  { %1171 = vmatpush3.msra.mxu0 %v1472_v16 }
 0x37b   :  { %1210 = vmatprep.subr.mxu0 %v1344_v0 }
 0x41b   :  { %v438_v38 = vpop.f32.mrf.mxu0 }
 0x41c   :  { %v442_v39 = vadd.f32 %v438_v38, %v371_v37 }
 0x41d   :  { %v1104_v40 = vpop.f32.mrf.mxu0 }
 0x41e   :  { %v443_v41 = vmax.f32 %v442_v39, 0.0 }
 0x420   :  { %1138 = vmatmul.mubr.f32.vlgmr.msra.gmra.mxu1 %v443_v41 }
 0x421   :  { %1176 = vmatpush3.msra.mxu1 %v1387_v1  ;;  %1207 = vmatprep.mubr.msk.f32.mxu1 %vm1345_vm0, %v1344_v0 }
 0x422   :  { %1177 = vmatprep.subr.mxu1 %v1344_v0 }
 0x423   :  { %1178 = vmatpush3.msra.mxu1 %v1389_v2  ;;  %v668_v2 = vld [vmem:[#allocation7 + $0x10] sm:$0xff] }
 0x424   :  { %1179 = vmatprep.subr.mxu1 %v1344_v0 }
 0x425   :  { %1180 = vmatpush3.msra.mxu1 %v1394_v3  ;;  %v667_v3 = vld [vmem:[#allocation7 + $0x8] sm:$0xff] }
 0x426   :  { %1181 = vmatprep.subr.mxu1 %v1344_v0 }
 0x427   :  { %1182 = vmatpush3.msra.mxu1 %v1400_v4  ;;  %v666_v4 = vld [vmem:[#allocation7] sm:$0xff] }
 0x428   :  { %1183 = vmatprep.subr.mxu1 %v1344_v0 }
 0x429   :  { %1184 = vmatpush3.msra.mxu1 %v1406_v5  ;;  %v593_v5 = vld [vmem:[#allocation2 + $0x38] sm:$0xff] }
 0x42a   :  { %1185 = vmatprep.subr.mxu1 %v1344_v0 }
 0x42b   :  { %1186 = vmatpush3.msra.mxu1 %v1412_v6 }
 0x42c   :  { %1187 = vmatprep.subr.mxu1 %v1344_v0 }
 0x42d   :  { %1188 = vmatpush3.msra.mxu1 %v1418_v7 }
 0x42e   :  { %1189 = vmatprep.subr.mxu1 %v1344_v0 }
 0x42f   :  { %1190 = vmatpush3.msra.mxu1 %v1424_v8 }
 0x430   :  { %1191 = vmatprep.subr.mxu1 %v1344_v0 }
 0x431   :  { %1192 = vmatpush3.msra.mxu1 %v1430_v9 }
 0x432   :  { %1193 = vmatprep.subr.mxu1 %v1344_v0 }
 0x433   :  { %1194 = vmatpush3.msra.mxu1 %v1436_v10  ;;  %v776_v10 = vld [vmem:[%s1713_s3] ss:$0 sm:$0xff] }
 0x434   :  { %1195 = vmatprep.subr.mxu1 %v1344_v0 }
 0x435   :  { %1196 = vmatpush3.msra.mxu1 %v1442_v11 }
 0x436   :  { %1197 = vmatprep.subr.mxu1 %v1344_v0 }
 0x437   :  { %1198 = vmatpush3.msra.mxu1 %v1448_v12 }
 0x438   :  { %1199 = vmatprep.subr.mxu1 %v1344_v0 }
 0x439   :  { %1200 = vmatpush3.msra.mxu1 %v1454_v13 }
 0x43a   :  { %1201 = vmatprep.subr.mxu1 %v1344_v0 }
 0x43b   :  { %1202 = vmatpush3.msra.mxu1 %v1460_v14 }
 0x43c   :  { %1203 = vmatprep.subr.mxu1 %v1344_v0 }
 0x43d   :  { %1204 = vmatpush3.msra.mxu1 %v1466_v15 }
 0x43e   :  { %1205 = vmatprep.subr.mxu1 %v1344_v0 }
 0x43f   :  { %1206 = vmatpush3.msra.mxu1 %v1472_v16 }
 0x4e0   :  { %v512_v43 = vpop.f32.mrf.mxu1 }
 0x4e1   :  { %v516_v44 = vadd.f32 %v512_v43, %v445_v42 }
 0x4e2   :  { %v1139_v45 = vpop.f32.mrf.mxu1 }
 0x4e3   :  { %v517_v46 = vmax.f32 %v516_v44, 0.0 }
 0x4e5   :  { %1173 = vmatmul.mubr.f32.vlgmr.msra.gmra.mxu0 %v517_v46 }
 0x4e6   :  { %1242 = vmatprep.mubr.msk.f32.mxu0 %vm1345_vm0, %v1344_v0  ;;  %1211 = vmatpush3.msra.mxu0 %v681_v47 }
 0x4e7   :  { %1212 = vmatprep.subr.mxu0 %v1344_v0 }
 0x4e8   :  { %1213 = vmatpush3.msra.mxu0 %v680_v48 }
 0x4e9   :  { %1214 = vmatprep.subr.mxu0 %v1344_v0 }
 0x4ea   :  { %1215 = vmatpush3.msra.mxu0 %v679_v49 }
 0x4eb   :  { %1216 = vmatprep.subr.mxu0 %v1344_v0 }
 0x4ec   :  { %1217 = vmatpush3.msra.mxu0 %v678_v50 }
 0x4ed   :  { %1218 = vmatprep.subr.mxu0 %v1344_v0 }
 0x4ee   :  { %1219 = vmatpush3.msra.mxu0 %v677_v51 }
 0x4ef   :  { %1220 = vmatprep.subr.mxu0 %v1344_v0 }
 0x4f0   :  { %1221 = vmatpush3.msra.mxu0 %v676_v52 }
 0x4f1   :  { %1222 = vmatprep.subr.mxu0 %v1344_v0 }
 0x4f2   :  { %1223 = vmatpush3.msra.mxu0 %v675_v53 }
 0x4f3   :  { %1224 = vmatprep.subr.mxu0 %v1344_v0 }
 0x4f4   :  { %1225 = vmatpush3.msra.mxu0 %v674_v54 }
 0x4f5   :  { %1226 = vmatprep.subr.mxu0 %v1344_v0 }
 0x4f6   :  { %1227 = vmatpush3.msra.mxu0 %v673_v55 }
 0x4f7   :  { %1228 = vmatprep.subr.mxu0 %v1344_v0 }
 0x4f8   :  { %1229 = vmatpush3.msra.mxu0 %v672_v56 }
 0x4f9   :  { %1230 = vmatprep.subr.mxu0 %v1344_v0 }
 0x4fa   :  { %1231 = vmatpush3.msra.mxu0 %v671_v57 }
 0x4fb   :  { %1232 = vmatprep.subr.mxu0 %v1344_v0 }
 0x4fc   :  { %1233 = vmatpush3.msra.mxu0 %v670_v58 }
 0x4fd   :  { %1234 = vmatprep.subr.mxu0 %v1344_v0 }
 0x4fe   :  { %1235 = vmatpush3.msra.mxu0 %v669_v59 }
 0x4ff   :  { %1236 = vmatprep.subr.mxu0 %v1344_v0 }
 0x500   :  { %1237 = vmatpush3.msra.mxu0 %v668_v2 }
 0x501   :  { %1238 = vmatprep.subr.mxu0 %v1344_v0 }
 0x502   :  { %1239 = vmatpush3.msra.mxu0 %v667_v3 }
 0x503   :  { %1240 = vmatprep.subr.mxu0 %v1344_v0 }
 0x504   :  { %1241 = vmatpush3.msra.mxu0 %v666_v4 }
 0x5a5   :  { %v586_v61 = vpop.f32.mrf.mxu0 }
 0x5a6   :  { %v590_v62 = vadd.f32 %v586_v61, %v519_v60 }
 0x5a7   :  { %v1174_v63 = vpop.f32.mrf.mxu0 }
 0x5a8   :  { %v591_v1 = vmax.f32 %v590_v62, 0.0 }
 0x5aa   :  { %1208 = vmatmul.mubr.f32.vlgmr.msra.gmra.mxu1 %v591_v1 }
 0x66a   :  { %v660_v6 = vpop.f32.mrf.mxu1 }
 0x66b   :  { %v664_v7 = vadd.f32 %v660_v6, %v593_v5 }
 0x66c   :  { %v1209_v8 = vpop.f32.mrf.mxu1 }
 0x66d   :  { %v665_v9 = vmax.f32 %v664_v7, 0.0 }
 0x66f   :  { %1243 = vmatmul.mubr.f32.vlgmr.msra.gmra.mxu0 %v665_v9 }
 0x72f   :  { %v755_v11 = vpop.f32.mrf.mxu0 }
 0x730   :  { %v756_v12 = vadd.f32 %v776_v10, %v755_v11 }
 0x731   :  { %v1244_v13 = vpop.f32.mrf.mxu0 }
 0x732   :  { %759 = vst [vmem:[#allocation8] sm:$0xff] %v756_v12 }
 0x733   :  { %1324 = shalt.err (!%p1321_p5)
}
 0x734   :  { %769 = dma.vmem_to_hbm [thread:$0]  %s767_s6, 128, %s1714_s4, [#allocation4]  }
 0x735   :  { %1337 = dma.done.wait [#allocation4], 128  }
 0x736   :  { %1338 = vsyncadd [#allocation4], 4294967168 }
 0x737   :  { %773 = vsyncpa [#allocation3], 1 }
 0x738   :  { %774 = vsyncpa [#allocation6], 1 }
 0x739   :  { %775 = vsyncpa [#allocation4], 1 }

</bundles_post_ra>
